<compile_context>
chip_gen: v6e
topology: v6e:2x2x1
jax: 0.10.0
libtpu: 0.0.40
codegen_flags: <defaults>
</compile_context>

<pallas_src>
import jax
import jax.numpy as jnp
import numpy as np
from jax.experimental import pallas as pl
from jax.experimental.pallas import tpu as pltpu

# ----------------------------- configuration ------------------------------
D = 2                      # n_angles (torus T^2)
E = 2 * D                  # embedded input size (cos, sin per angle)
NH = 32                    # n_neurons
N_OFF = D * (D - 1) // 2   # = 1 off-diagonal Cholesky entry
NHEAD = D + N_OFF + 1      # fused head width: [diag(2) | off(1) | V(1)] = 4
EPS = 1e-4                 # PD regularizer on H
DTYPE = jnp.float32
TM = 128                   # batch tile (lane width per block)


def _softplus(z):
    # numerically-safe softplus, identical formula in kernel and reference
    return jnp.where(z > 20.0, z, jnp.log1p(jnp.exp(jnp.minimum(z, 20.0))))


# ------------------------------- the kernel -------------------------------
def lode_t_kernel(x_ref, w1t_ref, b1t_ref, w2t_ref, b2t_ref,
                  wht_ref, bht_ref, out_ref):
    xt = x_ref[...]                      # [3D, TM], rows = [q | q_dot | tau]
    q = xt[0:D, :]                       # [2, TM]
    q_dot = xt[D:2 * D, :]               # [2, TM]
    qd0 = q_dot[0:1, :]
    qd1 = q_dot[1:2, :]
    tau0 = xt[2 * D:2 * D + 1, :]
    tau1 = xt[2 * D + 1:2 * D + 2, :]

    cq = jnp.cos(q)                      # [2, TM]
    sq = jnp.sin(q)

    w1t = w1t_ref[...]                   # [NH, E]
    b1t = b1t_ref[...]                   # [NH, 1]

    # ---- layer 1 (primal): z1 = W1^T @ [cos q; sin q] + b1 ----------------
    new_q = jnp.concatenate([cq, sq], axis=0)                       # [E, TM]
    z1 = jnp.dot(w1t, new_q, preferred_element_type=jnp.float32) + b1t
    h1 = jnp.tanh(z1)                                               # [NH, TM]
    dact1 = 1.0 - h1 * h1

    # ---- layer 1 (tangents): sparse seeds -> two broadcast FMAs each ------
    # d new_q / d q_j has only 2 nonzeros: -sin(q_j) at row j, cos(q_j) at D+j
    th1 = []
    for j in range(D):
        tz1_j = (w1t[:, j:j + 1] * (-sq[j:j + 1, :])
                 + w1t[:, D + j:D + j + 1] * cq[j:j + 1, :])        # [NH, TM]
        th1.append(dact1 * tz1_j)

    # ---- layer 2: one fused matmul over [primal | t0 | t1] on the lane axis
    w2t = w2t_ref[...]                                              # [NH, NH]
    s1 = jnp.concatenate([h1] + th1, axis=1)                        # [NH, 3*TM]
    z2_all = jnp.dot(w2t, s1, preferred_element_type=jnp.float32)
    tm = h1.shape[1]
    h2 = jnp.tanh(z2_all[:, 0:tm] + b2t_ref[...])                   # [NH, TM]
    dact2 = 1.0 - h2 * h2
    th2 = [dact2 * z2_all[:, (j + 1) * tm:(j + 2) * tm] for j in range(D)]

    # ---- fused heads: [Wd | Wo | Wv]^T @ [primal | t0 | t1] ---------------
    wht = wht_ref[...]                                              # [4, NH]
    s2 = jnp.concatenate([h2] + th2, axis=1)                        # [NH, 3*TM]
    head_all = jnp.dot(wht, s2, preferred_element_type=jnp.float32) # [4, 3*TM]
    head_p = head_all[:, 0:tm] + bht_ref[...]                       # [4, TM]
    head_t = [head_all[:, (j + 1) * tm:(j + 2) * tm] for j in range(D)]

    z_diag = head_p[0:D, :]              # [2, TM] pre-activation of L diagonal
    lo = head_p[D:D + 1, :]              # [1, TM] off-diagonal entry
    # row D+1 of head_p is V itself; only its gradient (in head_t) is needed.

    sp = _softplus(z_diag)               # l_diag
    sig = jnp.exp(z_diag - sp)           # softplus' (= sigmoid), reuses softplus
    ld0 = sp[0:1, :]
    ld1 = sp[1:2, :]

    # H = L L^T + eps*I,  L = [[ld0, 0], [lo, ld1]]
    H00 = ld0 * ld0 + EPS
    H01 = ld0 * lo
    H11 = lo * lo + ld1 * ld1 + EPS

    # ---- Coriolis, accumulated per tangent direction (bounded live temps) -
    c0 = jnp.zeros_like(qd0)
    c1 = jnp.zeros_like(qd0)
    dV = []
    for j in range(D):
        tj = head_t[j]                   # [4, TM] pre-activation tangents
        dld = sig * tj[0:D, :]           # d l_diag / d q_j
        dld0 = dld[0:1, :]
        dld1 = dld[1:2, :]
        dlo = tj[D:D + 1, :]             # d l_off / d q_j
        dV.append(tj[D + 1:D + 2, :])    # d V / d q_j

        dH00 = 2.0 * ld0 * dld0
        dH01 = dld0 * lo + ld0 * dlo
        dH11 = 2.0 * (lo * dlo + ld1 * dld1)

        hv0 = dH00 * qd0 + dH01 * qd1    # (dH/dq_j) @ q_dot
        hv1 = dH01 * qd0 + dH11 * qd1
        qdj = q_dot[j:j + 1, :]
        c0 = c0 + hv0 * qdj
        c1 = c1 + hv1 * qdj
        ke_j = 0.5 * (hv0 * qd0 + hv1 * qd1)   # 0.5 q_dot^T (dH/dq_j) q_dot
        if j == 0:
            c0 = c0 - ke_j
        else:
            c1 = c1 - ke_j

    # ---- Euler-Lagrange: H q_ddot = tau - c - g  (2x2 Cramer) -------------
    rhs0 = tau0 - c0 - dV[0]
    rhs1 = tau1 - c1 - dV[1]
    det = H00 * H11 - H01 * H01
    r = pl.reciprocal(det, approx=True)
    r = r * (2.0 - det * r)              # one Newton step -> full f32 accuracy
    qdd0 = (H11 * rhs0 - H01 * rhs1) * r
    qdd1 = (H00 * rhs1 - H01 * rhs0) * r

    out_ref[...] = jnp.concatenate([q_dot, qdd0, qdd1], axis=0)     # [4, TM]


# ------------------------------- the wrapper -------------------------------
def lode_t_forward(t, x, params, tm=TM):
    """Pallas forward of LODE_T.forward(t, x). `t` is unused (ODE signature)."""
    del t
    M = x.shape[0]
    assert x.shape[1] == 3 * D, "only n_angles == 2 (T^2) is implemented"

    n_blocks = pl.cdiv(M, tm)
    m_pad = n_blocks * tm

    # batch on lanes; pad (with zeros -> well-defined math) to a tile multiple
    xt = x.T                                                     # [3D, M]
    if m_pad != M:
        xt = jnp.pad(xt, ((0, 0), (0, m_pad - M)))

    # pre-transposed / fused weights (one-time XLA work)
    w1t = params["W1"].T                                         # [NH, E]
    w2t = params["W2"].T                                         # [NH, NH]
    wht = jnp.concatenate([params["Wd"], params["Wo"], params["Wv"]],
                          axis=1).T                              # [4, NH]
    b1t = params["b1"].T                                         # [NH, 1]
    b2t = params["b2"].T                                         # [NH, 1]
    bht = jnp.concatenate([params["bd"], params["bo"], params["bv"]],
                          axis=1).T                              # [4, 1]

    def wspec(shape):
        return pl.BlockSpec(shape, lambda i: (0,) * len(shape))

    out_t = pl.pallas_call(
        lode_t_kernel,
        out_shape=jax.ShapeDtypeStruct((2 * D, m_pad), DTYPE),
        grid=(n_blocks,),
        in_specs=[pl.BlockSpec((3 * D, tm), lambda i: (0, i)),
                  wspec(w1t.shape), wspec(b1t.shape),
                  wspec(w2t.shape), wspec(b2t.shape),
                  wspec(wht.shape), wspec(bht.shape)],
        out_specs=pl.BlockSpec((2 * D, tm), lambda i: (0, i)),
        compiler_params=pltpu.CompilerParams(
            dimension_semantics=("parallel",)),
    )(xt, w1t, b1t, w2t, b2t, wht, bht)

    out = out_t[:, :M].T                                         # [M, 2D]
    return jnp.concatenate([out, jnp.zeros((M, D), DTYPE)], axis=1)


# --------------------------- pure-JAX reference ----------------------------
def _rigid_body_single(qi, params):
    new_q = jnp.concatenate([jnp.cos(qi), jnp.sin(qi)])
    h = jnp.tanh(new_q @ params["W1"] + params["b1"][0])
    h = jnp.tanh(h @ params["W2"] + params["b2"][0])
    ld = _softplus(h @ params["Wd"] + params["bd"][0])
    lo = h @ params["Wo"] + params["bo"][0]
    V = (h @ params["Wv"] + params["bv"][0])[0]
    L = jnp.array([[ld[0], 0.0], [lo[0], ld[1]]])
    H = L @ L.T + EPS * jnp.eye(2, dtype=DTYPE)
    return H, V


def lode_t_forward_ref(t, x, params):
    del t
    q, q_dot, tau = x[:, :D], x[:, D:2 * D], x[:, 2 * D:]
    H = jax.vmap(lambda qi: _rigid_body_single(qi, params)[0])(q)               # [m,d,d]
    dH = jax.vmap(jax.jacfwd(lambda qi: _rigid_body_single(qi, params)[0]))(q)  # [m,d,d,d]
    g = jax.vmap(jax.grad(lambda qi: _rigid_body_single(qi, params)[1]))(q)     # [m,d]
    Hv_field = jnp.einsum('bikj,bk->bij', dH, q_dot)
    KE_field = 0.5 * jnp.einsum('bikj,bi,bk->bj', dH, q_dot, q_dot)
    c = jnp.einsum('bij,bj->bi', Hv_field, q_dot) - KE_field
    rhs = tau - c - g
    q_ddot = jnp.linalg.solve(H, rhs[..., None])[..., 0]
    return jnp.concatenate([q_dot, q_ddot, jnp.zeros_like(q_dot)], axis=1)


# ----------------------------------- main -----------------------------------
if __name__ == "__main__":
    key = jax.random.PRNGKey(0)
    ks = jax.random.split(key, 12)

    def init_w(k, shape):
        fan_in = shape[0]
        return (jax.random.normal(k, shape, DTYPE) / jnp.sqrt(fan_in)).astype(DTYPE)

    params = {
        "W1": init_w(ks[0], (E, NH)),     "b1": 0.1 * jax.random.normal(ks[1], (1, NH), DTYPE),
        "W2": init_w(ks[2], (NH, NH)),    "b2": 0.1 * jax.random.normal(ks[3], (1, NH), DTYPE),
        "Wd": init_w(ks[4], (NH, D)),     "bd": 0.1 * jax.random.normal(ks[5], (1, D), DTYPE),
        "Wo": init_w(ks[6], (NH, N_OFF)), "bo": 0.1 * jax.random.normal(ks[7], (1, N_OFF), DTYPE),
        "Wv": init_w(ks[8], (NH, 1)),     "bv": 0.1 * jax.random.normal(ks[9], (1, 1), DTYPE),
    }

    BATCH = 8
    x = jax.random.normal(ks[10], (BATCH, 3 * D), DTYPE)   # [q | q_dot | tau]
    t = jnp.float32(0.0)

    out = jax.block_until_ready(lode_t_forward(t, x, params))
    ref = jax.block_until_ready(lode_t_forward_ref(t, x, params))

    np.testing.assert_allclose(np.asarray(out), np.asarray(ref),
                               rtol=1e-3, atol=1e-3)
    print("KERNEL_OK")
</pallas_src>

<mosaic_0001>
module attributes {stable_mosaic.version = 11 : i64} {
  func.func @lode_t_kernel(%arg0: i32, %arg1: memref<6x128xf32, #tpu.memory_space<vmem>>, %arg2: memref<32x4xf32, #tpu.memory_space<vmem>>, %arg3: memref<32x1xf32, #tpu.memory_space<vmem>>, %arg4: memref<32x32xf32, #tpu.memory_space<vmem>>, %arg5: memref<32x1xf32, #tpu.memory_space<vmem>>, %arg6: memref<4x32xf32, #tpu.memory_space<vmem>>, %arg7: memref<4x1xf32, #tpu.memory_space<vmem>>, %arg8: memref<4x128xf32, #tpu.memory_space<vmem>>) attributes {dimension_semantics = [#tpu.dimension_semantics<parallel>], iteration_bounds = array<i64: 1>, scalar_prefetch = 0 : i64, scratch_operands = 0 : i64, tpu.core_type = #tpu.core_type<tc>, window_params = [{transform_indices = @transform_0, window_bounds = array<i64: 6, 128>}, {pipeline_mode = #tpu.pipeline_mode<synchronous>, transform_indices = @transform_1, window_bounds = array<i64: 32, 4>}, {pipeline_mode = #tpu.pipeline_mode<synchronous>, transform_indices = @transform_2, window_bounds = array<i64: 32, 1>}, {pipeline_mode = #tpu.pipeline_mode<synchronous>, transform_indices = @transform_3, window_bounds = array<i64: 32, 32>}, {pipeline_mode = #tpu.pipeline_mode<synchronous>, transform_indices = @transform_4, window_bounds = array<i64: 32, 1>}, {pipeline_mode = #tpu.pipeline_mode<synchronous>, transform_indices = @transform_5, window_bounds = array<i64: 4, 32>}, {pipeline_mode = #tpu.pipeline_mode<synchronous>, transform_indices = @transform_6, window_bounds = array<i64: 4, 1>}, {transform_indices = @transform_7, window_bounds = array<i64: 4, 128>}]} {
    %c0 = arith.constant 0 : index
    %c0_0 = arith.constant 0 : index
    %0 = vector.load %arg1[%c0, %c0_0] : memref<6x128xf32, #tpu.memory_space<vmem>>, vector<6x128xf32>
    %1 = vector.extract_strided_slice %0 {offsets = [0, 0], sizes = [2, 128], strides = [1, 1]} : vector<6x128xf32> to vector<2x128xf32>
    %2 = vector.extract_strided_slice %0 {offsets = [2, 0], sizes = [2, 128], strides = [1, 1]} : vector<6x128xf32> to vector<2x128xf32>
    %3 = vector.extract_strided_slice %2 {offsets = [0, 0], sizes = [1, 128], strides = [1, 1]} : vector<2x128xf32> to vector<1x128xf32>
    %4 = vector.extract_strided_slice %2 {offsets = [1, 0], sizes = [1, 128], strides = [1, 1]} : vector<2x128xf32> to vector<1x128xf32>
    %5 = vector.extract_strided_slice %0 {offsets = [4, 0], sizes = [1, 128], strides = [1, 1]} : vector<6x128xf32> to vector<1x128xf32>
    %6 = vector.extract_strided_slice %0 {offsets = [5, 0], sizes = [1, 128], strides = [1, 1]} : vector<6x128xf32> to vector<1x128xf32>
    %7 = math.cos %1 : vector<2x128xf32>
    %8 = math.sin %1 : vector<2x128xf32>
    %c0_1 = arith.constant 0 : index
    %c0_2 = arith.constant 0 : index
    %9 = vector.load %arg2[%c0_1, %c0_2] : memref<32x4xf32, #tpu.memory_space<vmem>>, vector<32x4xf32>
    %c0_3 = arith.constant 0 : index
    %c0_4 = arith.constant 0 : index
    %10 = vector.load %arg3[%c0_3, %c0_4] : memref<32x1xf32, #tpu.memory_space<vmem>>, vector<32x1xf32>
    %11 = tpu.concatenate %7, %8 in 0 : vector<2x128xf32>, vector<2x128xf32> -> vector<4x128xf32>
    %cst = arith.constant dense<0.000000e+00> : vector<32x128xf32>
    %12 = tpu.matmul %9, %11, %cst {dimension_numbers = #tpu.dot_dimension_numbers<[1], [0], [0], [1], [0, 0, 1, 1], [], []>} : vector<32x4xf32>, vector<4x128xf32>, vector<32x128xf32> -> vector<32x128xf32>
    %13 = vector.broadcast %10 : vector<32x1xf32> to vector<32x128xf32>
    %14 = arith.addf %12, %13 : vector<32x128xf32>
    %15 = math.tanh %14 : vector<32x128xf32>
    %16 = arith.mulf %15, %15 : vector<32x128xf32>
    %cst_5 = arith.constant 1.000000e+00 : f32
    %17 = vector.broadcast %cst_5 : f32 to vector<32x128xf32>
    %18 = arith.subf %17, %16 : vector<32x128xf32>
    %19 = vector.extract_strided_slice %9 {offsets = [0, 0], sizes = [32, 1], strides = [1, 1]} : vector<32x4xf32> to vector<32x1xf32>
    %20 = vector.extract_strided_slice %8 {offsets = [0, 0], sizes = [1, 128], strides = [1, 1]} : vector<2x128xf32> to vector<1x128xf32>
    %cst_6 = arith.constant 0.000000e+00 : f32
    %21 = vector.broadcast %cst_6 : f32 to vector<1x128xf32>
    %22 = arith.subf %21, %20 : vector<1x128xf32>
    %23 = vector.broadcast %19 : vector<32x1xf32> to vector<32x128xf32>
    %24 = vector.broadcast %22 : vector<1x128xf32> to vector<32x128xf32>
    %25 = arith.mulf %23, %24 : vector<32x128xf32>
    %26 = vector.extract_strided_slice %9 {offsets = [0, 2], sizes = [32, 1], strides = [1, 1]} : vector<32x4xf32> to vector<32x1xf32>
    %27 = vector.extract_strided_slice %7 {offsets = [0, 0], sizes = [1, 128], strides = [1, 1]} : vector<2x128xf32> to vector<1x128xf32>
    %28 = vector.broadcast %26 : vector<32x1xf32> to vector<32x128xf32>
    %29 = vector.broadcast %27 : vector<1x128xf32> to vector<32x128xf32>
    %30 = arith.mulf %28, %29 : vector<32x128xf32>
    %31 = arith.addf %25, %30 : vector<32x128xf32>
    %32 = arith.mulf %18, %31 : vector<32x128xf32>
    %33 = vector.extract_strided_slice %9 {offsets = [0, 1], sizes = [32, 1], strides = [1, 1]} : vector<32x4xf32> to vector<32x1xf32>
    %34 = vector.extract_strided_slice %8 {offsets = [1, 0], sizes = [1, 128], strides = [1, 1]} : vector<2x128xf32> to vector<1x128xf32>
    %cst_7 = arith.constant 0.000000e+00 : f32
    %35 = vector.broadcast %cst_7 : f32 to vector<1x128xf32>
    %36 = arith.subf %35, %34 : vector<1x128xf32>
    %37 = vector.broadcast %33 : vector<32x1xf32> to vector<32x128xf32>
    %38 = vector.broadcast %36 : vector<1x128xf32> to vector<32x128xf32>
    %39 = arith.mulf %37, %38 : vector<32x128xf32>
    %40 = vector.extract_strided_slice %9 {offsets = [0, 3], sizes = [32, 1], strides = [1, 1]} : vector<32x4xf32> to vector<32x1xf32>
    %41 = vector.extract_strided_slice %7 {offsets = [1, 0], sizes = [1, 128], strides = [1, 1]} : vector<2x128xf32> to vector<1x128xf32>
    %42 = vector.broadcast %40 : vector<32x1xf32> to vector<32x128xf32>
    %43 = vector.broadcast %41 : vector<1x128xf32> to vector<32x128xf32>
    %44 = arith.mulf %42, %43 : vector<32x128xf32>
    %45 = arith.addf %39, %44 : vector<32x128xf32>
    %46 = arith.mulf %18, %45 : vector<32x128xf32>
    %c0_8 = arith.constant 0 : index
    %c0_9 = arith.constant 0 : index
    %47 = vector.load %arg4[%c0_8, %c0_9] : memref<32x32xf32, #tpu.memory_space<vmem>>, vector<32x32xf32>
    %48 = tpu.concatenate %15, %32, %46 in 1 : vector<32x128xf32>, vector<32x128xf32>, vector<32x128xf32> -> vector<32x384xf32>
    %cst_10 = arith.constant dense<0.000000e+00> : vector<32x384xf32>
    %49 = tpu.matmul %47, %48, %cst_10 {dimension_numbers = #tpu.dot_dimension_numbers<[1], [0], [0], [1], [0, 0, 1, 1], [], []>} : vector<32x32xf32>, vector<32x384xf32>, vector<32x384xf32> -> vector<32x384xf32>
    %50 = vector.extract_strided_slice %49 {offsets = [0, 0], sizes = [32, 128], strides = [1, 1]} : vector<32x384xf32> to vector<32x128xf32>
    %c0_11 = arith.constant 0 : index
    %c0_12 = arith.constant 0 : index
    %51 = vector.load %arg5[%c0_11, %c0_12] : memref<32x1xf32, #tpu.memory_space<vmem>>, vector<32x1xf32>
    %52 = vector.broadcast %51 : vector<32x1xf32> to vector<32x128xf32>
    %53 = arith.addf %50, %52 : vector<32x128xf32>
    %54 = math.tanh %53 : vector<32x128xf32>
    %55 = arith.mulf %54, %54 : vector<32x128xf32>
    %cst_13 = arith.constant 1.000000e+00 : f32
    %56 = vector.broadcast %cst_13 : f32 to vector<32x128xf32>
    %57 = arith.subf %56, %55 : vector<32x128xf32>
    %58 = vector.extract_strided_slice %49 {offsets = [0, 128], sizes = [32, 128], strides = [1, 1]} : vector<32x384xf32> to vector<32x128xf32>
    %59 = arith.mulf %57, %58 : vector<32x128xf32>
    %60 = vector.extract_strided_slice %49 {offsets = [0, 256], sizes = [32, 128], strides = [1, 1]} : vector<32x384xf32> to vector<32x128xf32>
    %61 = arith.mulf %57, %60 : vector<32x128xf32>
    %c0_14 = arith.constant 0 : index
    %c0_15 = arith.constant 0 : index
    %62 = vector.load %arg6[%c0_14, %c0_15] : memref<4x32xf32, #tpu.memory_space<vmem>>, vector<4x32xf32>
    %63 = tpu.concatenate %54, %59, %61 in 1 : vector<32x128xf32>, vector<32x128xf32>, vector<32x128xf32> -> vector<32x384xf32>
    %cst_16 = arith.constant dense<0.000000e+00> : vector<4x384xf32>
    %64 = tpu.matmul %62, %63, %cst_16 {dimension_numbers = #tpu.dot_dimension_numbers<[1], [0], [0], [1], [0, 0, 1, 1], [], []>} : vector<4x32xf32>, vector<32x384xf32>, vector<4x384xf32> -> vector<4x384xf32>
    %65 = vector.extract_strided_slice %64 {offsets = [0, 0], sizes = [4, 128], strides = [1, 1]} : vector<4x384xf32> to vector<4x128xf32>
    %c0_17 = arith.constant 0 : index
    %c0_18 = arith.constant 0 : index
    %66 = vector.load %arg7[%c0_17, %c0_18] : memref<4x1xf32, #tpu.memory_space<vmem>>, vector<4x1xf32>
    %67 = vector.broadcast %66 : vector<4x1xf32> to vector<4x128xf32>
    %68 = arith.addf %65, %67 : vector<4x128xf32>
    %69 = vector.extract_strided_slice %64 {offsets = [0, 128], sizes = [4, 128], strides = [1, 1]} : vector<4x384xf32> to vector<4x128xf32>
    %70 = vector.extract_strided_slice %64 {offsets = [0, 256], sizes = [4, 128], strides = [1, 1]} : vector<4x384xf32> to vector<4x128xf32>
    %71 = vector.extract_strided_slice %68 {offsets = [0, 0], sizes = [2, 128], strides = [1, 1]} : vector<4x128xf32> to vector<2x128xf32>
    %72 = vector.extract_strided_slice %68 {offsets = [2, 0], sizes = [1, 128], strides = [1, 1]} : vector<4x128xf32> to vector<1x128xf32>
    %cst_19 = arith.constant 2.000000e+01 : f32
    %73 = vector.broadcast %cst_19 : f32 to vector<2x128xf32>
    %74 = arith.cmpf ogt, %71, %73 : vector<2x128xf32>
    %cst_20 = arith.constant 2.000000e+01 : f32
    %75 = vector.broadcast %cst_20 : f32 to vector<2x128xf32>
    %76 = arith.minimumf %71, %75 : vector<2x128xf32>
    %77 = math.exp %76 : vector<2x128xf32>
    %78 = math.log1p %77 : vector<2x128xf32>
    %79 = arith.select %74, %71, %78 : vector<2x128xi1>, vector<2x128xf32>
    %80 = arith.subf %71, %79 : vector<2x128xf32>
    %81 = math.exp %80 : vector<2x128xf32>
    %82 = vector.extract_strided_slice %79 {offsets = [0, 0], sizes = [1, 128], strides = [1, 1]} : vector<2x128xf32> to vector<1x128xf32>
    %83 = vector.extract_strided_slice %79 {offsets = [1, 0], sizes = [1, 128], strides = [1, 1]} : vector<2x128xf32> to vector<1x128xf32>
    %84 = arith.mulf %82, %82 : vector<1x128xf32>
    %cst_21 = arith.constant 9.99999974E-5 : f32
    %85 = vector.broadcast %cst_21 : f32 to vector<1x128xf32>
    %86 = arith.addf %84, %85 : vector<1x128xf32>
    %87 = arith.mulf %82, %72 : vector<1x128xf32>
    %88 = arith.mulf %72, %72 : vector<1x128xf32>
    %89 = arith.mulf %83, %83 : vector<1x128xf32>
    %90 = arith.addf %88, %89 : vector<1x128xf32>
    %cst_22 = arith.constant 9.99999974E-5 : f32
    %91 = vector.broadcast %cst_22 : f32 to vector<1x128xf32>
    %92 = arith.addf %90, %91 : vector<1x128xf32>
    %cst_23 = arith.constant 0.000000e+00 : f32
    %93 = vector.broadcast %cst_23 : f32 to vector<1x128xf32>
    %cst_24 = arith.constant 0.000000e+00 : f32
    %94 = vector.broadcast %cst_24 : f32 to vector<1x128xf32>
    %95 = vector.extract_strided_slice %69 {offsets = [0, 0], sizes = [2, 128], strides = [1, 1]} : vector<4x128xf32> to vector<2x128xf32>
    %96 = arith.mulf %81, %95 : vector<2x128xf32>
    %97 = vector.extract_strided_slice %96 {offsets = [0, 0], sizes = [1, 128], strides = [1, 1]} : vector<2x128xf32> to vector<1x128xf32>
    %98 = vector.extract_strided_slice %96 {offsets = [1, 0], sizes = [1, 128], strides = [1, 1]} : vector<2x128xf32> to vector<1x128xf32>
    %99 = vector.extract_strided_slice %69 {offsets = [2, 0], sizes = [1, 128], strides = [1, 1]} : vector<4x128xf32> to vector<1x128xf32>
    %100 = vector.extract_strided_slice %69 {offsets = [3, 0], sizes = [1, 128], strides = [1, 1]} : vector<4x128xf32> to vector<1x128xf32>
    %cst_25 = arith.constant 2.000000e+00 : f32
    %101 = vector.broadcast %cst_25 : f32 to vector<1x128xf32>
    %102 = arith.mulf %101, %82 : vector<1x128xf32>
    %103 = arith.mulf %102, %97 : vector<1x128xf32>
    %104 = arith.mulf %97, %72 : vector<1x128xf32>
    %105 = arith.mulf %82, %99 : vector<1x128xf32>
    %106 = arith.addf %104, %105 : vector<1x128xf32>
    %107 = arith.mulf %72, %99 : vector<1x128xf32>
    %108 = arith.mulf %83, %98 : vector<1x128xf32>
    %109 = arith.addf %107, %108 : vector<1x128xf32>
    %cst_26 = arith.constant 2.000000e+00 : f32
    %110 = vector.broadcast %cst_26 : f32 to vector<1x128xf32>
    %111 = arith.mulf %110, %109 : vector<1x128xf32>
    %112 = arith.mulf %103, %3 : vector<1x128xf32>
    %113 = arith.mulf %106, %4 : vector<1x128xf32>
    %114 = arith.addf %112, %113 : vector<1x128xf32>
    %115 = arith.mulf %106, %3 : vector<1x128xf32>
    %116 = arith.mulf %111, %4 : vector<1x128xf32>
    %117 = arith.addf %115, %116 : vector<1x128xf32>
    %118 = vector.extract_strided_slice %2 {offsets = [0, 0], sizes = [1, 128], strides = [1, 1]} : vector<2x128xf32> to vector<1x128xf32>
    %119 = arith.mulf %114, %118 : vector<1x128xf32>
    %120 = arith.addf %93, %119 : vector<1x128xf32>
    %121 = arith.mulf %117, %118 : vector<1x128xf32>
    %122 = arith.addf %94, %121 : vector<1x128xf32>
    %123 = arith.mulf %114, %3 : vector<1x128xf32>
    %124 = arith.mulf %117, %4 : vector<1x128xf32>
    %125 = arith.addf %123, %124 : vector<1x128xf32>
    %cst_27 = arith.constant 5.000000e-01 : f32
    %126 = vector.broadcast %cst_27 : f32 to vector<1x128xf32>
    %127 = arith.mulf %126, %125 : vector<1x128xf32>
    %128 = arith.subf %120, %127 : vector<1x128xf32>
    %129 = vector.extract_strided_slice %70 {offsets = [0, 0], sizes = [2, 128], strides = [1, 1]} : vector<4x128xf32> to vector<2x128xf32>
    %130 = arith.mulf %81, %129 : vector<2x128xf32>
    %131 = vector.extract_strided_slice %130 {offsets = [0, 0], sizes = [1, 128], strides = [1, 1]} : vector<2x128xf32> to vector<1x128xf32>
    %132 = vector.extract_strided_slice %130 {offsets = [1, 0], sizes = [1, 128], strides = [1, 1]} : vector<2x128xf32> to vector<1x128xf32>
    %133 = vector.extract_strided_slice %70 {offsets = [2, 0], sizes = [1, 128], strides = [1, 1]} : vector<4x128xf32> to vector<1x128xf32>
    %134 = vector.extract_strided_slice %70 {offsets = [3, 0], sizes = [1, 128], strides = [1, 1]} : vector<4x128xf32> to vector<1x128xf32>
    %cst_28 = arith.constant 2.000000e+00 : f32
    %135 = vector.broadcast %cst_28 : f32 to vector<1x128xf32>
    %136 = arith.mulf %135, %82 : vector<1x128xf32>
    %137 = arith.mulf %136, %131 : vector<1x128xf32>
    %138 = arith.mulf %131, %72 : vector<1x128xf32>
    %139 = arith.mulf %82, %133 : vector<1x128xf32>
    %140 = arith.addf %138, %139 : vector<1x128xf32>
    %141 = arith.mulf %72, %133 : vector<1x128xf32>
    %142 = arith.mulf %83, %132 : vector<1x128xf32>
    %143 = arith.addf %141, %142 : vector<1x128xf32>
    %cst_29 = arith.constant 2.000000e+00 : f32
    %144 = vector.broadcast %cst_29 : f32 to vector<1x128xf32>
    %145 = arith.mulf %144, %143 : vector<1x128xf32>
    %146 = arith.mulf %137, %3 : vector<1x128xf32>
    %147 = arith.mulf %140, %4 : vector<1x128xf32>
    %148 = arith.addf %146, %147 : vector<1x128xf32>
    %149 = arith.mulf %140, %3 : vector<1x128xf32>
    %150 = arith.mulf %145, %4 : vector<1x128xf32>
    %151 = arith.addf %149, %150 : vector<1x128xf32>
    %152 = vector.extract_strided_slice %2 {offsets = [1, 0], sizes = [1, 128], strides = [1, 1]} : vector<2x128xf32> to vector<1x128xf32>
    %153 = arith.mulf %148, %152 : vector<1x128xf32>
    %154 = arith.addf %128, %153 : vector<1x128xf32>
    %155 = arith.mulf %151, %152 : vector<1x128xf32>
    %156 = arith.addf %122, %155 : vector<1x128xf32>
    %157 = arith.mulf %148, %3 : vector<1x128xf32>
    %158 = arith.mulf %151, %4 : vector<1x128xf32>
    %159 = arith.addf %157, %158 : vector<1x128xf32>
    %cst_30 = arith.constant 5.000000e-01 : f32
    %160 = vector.broadcast %cst_30 : f32 to vector<1x128xf32>
    %161 = arith.mulf %160, %159 : vector<1x128xf32>
    %162 = arith.subf %156, %161 : vector<1x128xf32>
    %163 = arith.subf %5, %154 : vector<1x128xf32>
    %164 = arith.subf %163, %100 : vector<1x128xf32>
    %165 = arith.subf %6, %162 : vector<1x128xf32>
    %166 = arith.subf %165, %134 : vector<1x128xf32>
    %167 = arith.mulf %86, %92 : vector<1x128xf32>
    %168 = arith.mulf %87, %87 : vector<1x128xf32>
    %169 = arith.subf %167, %168 : vector<1x128xf32>
    %170 = tpu.reciprocal %169 {approx = true} : vector<1x128xf32> -> vector<1x128xf32>
    %171 = arith.mulf %169, %170 : vector<1x128xf32>
    %cst_31 = arith.constant 2.000000e+00 : f32
    %172 = vector.broadcast %cst_31 : f32 to vector<1x128xf32>
    %173 = arith.subf %172, %171 : vector<1x128xf32>
    %174 = arith.mulf %170, %173 : vector<1x128xf32>
    %175 = arith.mulf %92, %164 : vector<1x128xf32>
    %176 = arith.mulf %87, %166 : vector<1x128xf32>
    %177 = arith.subf %175, %176 : vector<1x128xf32>
    %178 = arith.mulf %177, %174 : vector<1x128xf32>
    %179 = arith.mulf %86, %166 : vector<1x128xf32>
    %180 = arith.mulf %87, %164 : vector<1x128xf32>
    %181 = arith.subf %179, %180 : vector<1x128xf32>
    %182 = arith.mulf %181, %174 : vector<1x128xf32>
    %183 = tpu.concatenate %2, %178, %182 in 0 : vector<2x128xf32>, vector<1x128xf32>, vector<1x128xf32> -> vector<4x128xf32>
    %c0_32 = arith.constant 0 : index
    %c0_33 = arith.constant 0 : index
    %184 = vector.load %arg8[%c0_32, %c0_33] : memref<4x128xf32, #tpu.memory_space<vmem>>, vector<4x128xf32>
    tpu.vector_store %arg8[%c0_32, %c0_33], %183 {strides = array<i32>} : memref<4x128xf32, #tpu.memory_space<vmem>>, vector<4x128xf32>,
    return
  }
  func.func @transform_0(%arg0: i32) -> (i32, i32) {
    %c0_i32 = arith.constant 0 : i32
    %c0_i32_0 = arith.constant 0 : i32
    return %c0_i32, %arg0 : i32, i32
  }
  func.func @transform_1(%arg0: i32) -> (i32, i32) {
    %c0_i32 = arith.constant 0 : i32
    %c0_i32_0 = arith.constant 0 : i32
    %c0_i32_1 = arith.constant 0 : i32
    return %c0_i32, %c0_i32_0 : i32, i32
  }
  func.func @transform_2(%arg0: i32) -> (i32, i32) {
    %c0_i32 = arith.constant 0 : i32
    %c0_i32_0 = arith.constant 0 : i32
    %c0_i32_1 = arith.constant 0 : i32
    return %c0_i32, %c0_i32_0 : i32, i32
  }
  func.func @transform_3(%arg0: i32) -> (i32, i32) {
    %c0_i32 = arith.constant 0 : i32
    %c0_i32_0 = arith.constant 0 : i32
    %c0_i32_1 = arith.constant 0 : i32
    return %c0_i32, %c0_i32_0 : i32, i32
  }
  func.func @transform_4(%arg0: i32) -> (i32, i32) {
    %c0_i32 = arith.constant 0 : i32
    %c0_i32_0 = arith.constant 0 : i32
    %c0_i32_1 = arith.constant 0 : i32
    return %c0_i32, %c0_i32_0 : i32, i32
  }
  func.func @transform_5(%arg0: i32) -> (i32, i32) {
    %c0_i32 = arith.constant 0 : i32
    %c0_i32_0 = arith.constant 0 : i32
    %c0_i32_1 = arith.constant 0 : i32
    return %c0_i32, %c0_i32_0 : i32, i32
  }
  func.func @transform_6(%arg0: i32) -> (i32, i32) {
    %c0_i32 = arith.constant 0 : i32
    %c0_i32_0 = arith.constant 0 : i32
    %c0_i32_1 = arith.constant 0 : i32
    return %c0_i32, %c0_i32_0 : i32, i32
  }
  func.func @transform_7(%arg0: i32) -> (i32, i32) {
    %c0_i32 = arith.constant 0 : i32
    %c0_i32_0 = arith.constant 0 : i32
    return %c0_i32, %arg0 : i32, i32
  }
}

</mosaic_0001>

<bundles_post_ra>
// kernel: tpu_custom_call.1
= control target key start
LH: loop header
LB: loop body
LE: loop exit
PB: predicated region body
PF: predicated region fallthrough
CT: control target
= control target key end

     0   :  { %vm268_vm0 = vcmask 31744   ;;  %v1206_v7 = vmov 0   ;;  %s1463_s0 = inlined_call_operand.vmem [shape: f32[6,128], index: 0, kind: input, shape index: {}]   ;;  %s1464_s1 = inlined_call_operand.vmem [shape: f32[32,4], index: 1, kind: input, shape index: {}]   ;;  %s1465_s2 = inlined_call_operand.vmem [shape: f32[32,1], index: 2, kind: input, shape index: {}]   ;;  %s1466_s3 = inlined_call_operand.vmem [shape: f32[32,32], index: 3, kind: input, shape index: {}]   ;;  %s1467_s4 = inlined_call_operand.vmem [shape: f32[32,1], index: 4, kind: input, shape index: {}]   ;;  %s1468_s5 = inlined_call_operand.vmem [shape: f32[4,32], index: 5, kind: input, shape index: {}]   ;;  %s1469_s6 = inlined_call_operand.vmem [shape: f32[4,1], index: 6, kind: input, shape index: {}]   ;;  %s1470_s7 = inlined_call_operand.hbm [shape: f32[4,128], index: 7, kind: output, shape index: {}]  }
   0x1   :  { %v1262_v0 = vld [vmem:[%s1463_s0] sm:$0x3f]  ;;  %v240_v6 = vld [vmem:[%s1465_s2 + $0x8] sm:$0xff]  ;;  %1146 = vset.pattern.permute.xlu1 %v1206_v7  ;;  %1145 = vset.pattern.permute.xlu0 %v1206_v7  ;;  %v242_v8 = vld [vmem:[%s1465_s2 + $0x18] sm:$0xff] }
   0x2   :  { %v31_v1 = vand.u32 2139095040, %v1262_v0  ;;  %v28_v3 = vand.u32 2147483647, %v1262_v0  ;;  %v1269_v4 = vld [vmem:[%s1464_s1] sm:$0xff]  ;;  %255 = vperm.xlu1 %1146, %v240_v6   ;;  %265 = vperm.xlu0 %1145, %v242_v8  }
   0x3   :  { %1097 = vmatprep.mubr.msk.f32.mxu0 %vm268_vm0, %v1269_v4 }
   0x4   :  { %v32_v2 = vshrl.u32 %v31_v1, 23 }
   0x6   :  { %v1054_v5 = vadd.s32 4294967169, %v32_v2 }
   0x8   :  { %v38_v9 = vadd.s32 1, %v1054_v5 }
   0x9   :  { %12 = vsyncpa [#allocation3], 0  ;;  %v35_v10 = vand.u32 8388607, %v28_v3  ;;  %v239_v11 = vld [vmem:[%s1465_s2] sm:$0xff]  ;;  %v241_v12 = vld [vmem:[%s1465_s2 + $0x10] sm:$0xff] }
   0xa   :  { %vm39_vm1 = vcmp.gt.s32.totalorder %v38_v9, 0  ;;  %250 = vperm.xlu1 %1146, %v239_v11   ;;  %260 = vperm.xlu0 %1145, %v241_v12   ;;  %v1207_v18 = vmov 683565275   ;;  %v1208_v20 = vmov 2475754826   ;;  %v1292_v32 = vld [vmem:[%s1464_s1 + $0x18] sm:$0xff] }
   0xb   :  { %v40_v13 = vsel %vm39_vm1, %v38_v9, 0  ;;  %v36_v15 = vor.u32 8388608, %v35_v10  ;;  %v1209_v22 = vmov 2131351028   ;;  %v1210_v24 = vmov 2102212464  }
   0xc   :  { %v42_v14 = vand.u32 31, %v40_v13  ;;  %v41_v16 = vshrl.u32 %v40_v13, 5  ;;  %v1211_v26 = vmov 920167782   ;;  %v1212_v33 = vmov 2   ;;  %v1299_v47 = vld [vmem:[%s1464_s1 + $0x10] sm:$0xff] }
   0xd   :  { %v1213_v35 = vmov 1326507024   ;;  %v76_v37 = vshll.u32 %v36_v15, 8  ;;  %v1315_v60 = vld [vmem:[%s1464_s1 + $0x8] sm:$0xff]  ;;  %v1214_v5 = vmov 3   ;;  %v1215_v6 = vmov 1  }
   0xe   :  { %v43_v17 = vsub.s32 32, %v42_v14  ;;  %v45_v19 = vshll.u32 %v1207_v18, %v42_v14  ;;  %v48_v21 = vshll.u32 %v1208_v20, %v42_v14  ;;  %v51_v23 = vshll.u32 %v1209_v22, %v42_v14  ;;  %1147 = vset.pattern.permute.xlu1 %v1212_v33  ;;  %396 = vperm.xlu0 %1145, %v1292_v32  }
   0xf   :  { %v54_v25 = vshll.u32 %v1210_v24, %v42_v14  ;;  %v57_v27 = vshll.u32 %v1211_v26, %v42_v14  ;;  %vm60_vm2 = vcmp.lt.s32.totalorder %v41_v16, 1  ;;  %420 = vperm.xlu1 %1147, %v1292_v32   ;;  %vm63_vm3 = vcmp.lt.s32.totalorder %v41_v16, 4 }
  0x10   :  { %v44_v28 = vshrl.u32 %v1207_v18, %v43_v17  ;;  %v46_v29 = vshrl.u32 %v1208_v20, %v43_v17  ;;  %v49_v30 = vshrl.u32 %v1209_v22, %v43_v17  ;;  %v52_v31 = vshrl.u32 %v1210_v24, %v43_v17 }
  0x11   :  { %v55_v34 = vshrl.u32 %v1211_v26, %v43_v17  ;;  %v58_v36 = vshrl.u32 %v1213_v35, %v43_v17  ;;  %vm61_vm4 = vcmp.lt.s32.totalorder %v41_v16, 2  ;;  %vm62_vm5 = vcmp.lt.s32.totalorder %v41_v16, 3 }
  0x12   :  { %v47_v38 = vor.u32 %v46_v29, %v45_v19  ;;  %v50_v39 = vor.u32 %v49_v30, %v48_v21  ;;  %v53_v40 = vor.u32 %v52_v31, %v51_v23  ;;  %392 = vperm.xlu0 %1145, %v1299_v47   ;;  %vm30_vm8 = vcmp.lt.s32.totalorder %v1262_v0, 0 }
  0x13   :  { %v56_v41 = vor.u32 %v55_v34, %v54_v25  ;;  %v59_v42 = vor.u32 %v58_v36, %v57_v27  ;;  %416 = vperm.xlu1 %1147, %v1299_v47   ;;  %vm29_vm9 = vcmp.le.f32.partialorder %v28_v3, 0.7853982  ;;  %vm120_vm1 = vweird.f32 %v1262_v0 }
  0x14   :  { %v64_v43 = vsel %vm60_vm2, %v44_v28, %v47_v38  ;;  %v65_v44 = vsel %vm63_vm3, %v53_v40, 2102212464  ;;  %v68_v45 = vsel %vm60_vm2, %v47_v38, %v50_v39  ;;  %v72_v46 = vsel %vm60_vm2, %v50_v39, %v53_v40 }
  0x15   :  { %v66_v48 = vsel %vm62_vm5, %v50_v39, %v65_v44  ;;  %v69_v49 = vsel %vm63_vm3, %v56_v41, 920167782  ;;  %v73_v50 = vsel %vm63_vm3, %v59_v42, 1326507024  ;;  %vm246_vm2 = vcmask 1041408  }
  0x16   :  { %v70_v51 = vsel %vm62_vm5, %v53_v40, %v69_v49  ;;  %v74_v52 = vsel %vm62_vm5, %v56_v41, %v73_v50  ;;  %v67_v53 = vsel %vm61_vm4, %v64_v43, %v66_v48  ;;  %388 = vperm.xlu0 %1145, %v1315_v60   ;;  %vm281_vm3 = vcmask 1043456  }
  0x17   :  { %v71_v54 = vsel %vm61_vm4, %v68_v45, %v70_v51  ;;  %v75_v55 = vsel %vm61_vm4, %v72_v46, %v74_v52  ;;  %412 = vperm.xlu1 %1147, %v1315_v60   ;;  %v83_v61 = vmul.u32 %v76_v37, %v67_v53  ;;  %v399_v50 = vlaneseq }
  0x18   :  { %v1306_v56 = vmul.u32.u64.low %v76_v37, %v75_v55  ;;  %v1307_v57 = vmul.u32.u64.high %v76_v37, %v75_v55, %v1306_v56  ;;  %v1309_v58 = vmul.u32.u64.low %v76_v37, %v71_v54  ;;  %v1310_v59 = vmul.u32.u64.high %v76_v37, %v71_v54, %v1309_v58 }
  0x19   :  { %v400_v53 = vshrl.u32 %v399_v50, 7  ;;  %vm1217_vm4 = vmmov 0  }
  0x1a   :  { %vm85_vm6 = vc.u32 %v1307_v57, %v1309_v58  ;;  %v86_v62 = vadd.s32 1, %v1310_v59  ;;  %384 = vperm.xlu0 %1145, %v1269_v4   ;;  %v84_v15 = vadd.s32 %v1309_v58, %v1307_v57 }
  0x1b   :  { %408 = vperm.xlu1 %1147, %v1269_v4   ;;  %v401_v57 = vsub.s32 0, %v400_v53 }
  0x1c   :  { %v87_v63 = vsel %vm85_vm6, %v86_v62, %v1310_v59 }
  0x1d   :  { %v88_v1 = vadd.s32 %v87_v63, %v83_v61 }
  0x1e   :  { %1148 = vset.pattern.permute.xlu0 %v1215_v6 }
  0x1f   :  { %v89_v2 = vadd.s32 536870912, %v88_v1  ;;  %1149 = vset.pattern.permute.xlu1 %v1214_v5  ;;  %452 = vperm.xlu0 %1148, %v1292_v32  }
  0x20   :  { %476 = vperm.xlu1 %1149, %v1292_v32  }
  0x21   :  { %v90_v8 = vshrl.u32 %v89_v2, 30 }
  0x23   :  { %v91_v9 = vshll.u32 %v90_v8, 30  ;;  %1151 = vset.pattern.permute.xlu0 %v1214_v5  ;;  %v114_v28 = vsub.s32 4, %v90_v8 }
  0x24   :  { %1150 = vset.pattern.permute.xlu1 %v1215_v6  ;;  %472 = vperm.xlu0 %1151, %v1299_v47  }
  0x25   :  { %v92_v10 = vsub.s32 %v88_v1, %v91_v9  ;;  %448 = vperm.xlu1 %1150, %v1299_v47   ;;  %v115_v31 = vsel %vm30_vm8, %v114_v28, %v90_v8 }
  0x26   :  { %v117_v33 = vsel %vm29_vm9, 0, %v115_v31 }
  0x27   :  { %v94_v11 = vsub.s32 0, %v92_v10  ;;  %v224_v34 = vadd.s32 3, %v117_v33 }
  0x28   :  { %1153 = vset.pattern.permute.xlu0 %v1215_v6 }
  0x29   :  { %v1055_v12 = vmin.u32 %v94_v11, %v92_v10  ;;  %444 = vperm.xlu1 %1150, %v1315_v60   ;;  %440 = vperm.xlu0 %1153, %v1269_v4   ;;  %v225_v35 = vand.u32 3, %v224_v34 }
  0x2b   :  { %v96_v13 = vclz %v1055_v12  ;;  %vm230_vm11 = vcmp.eq.s32.totalorder %v225_v35, 2  ;;  %vm227_vm13 = vcmp.eq.s32.totalorder %v225_v35, 0  ;;  %vm226_vm15 = vcmp.lt.s32.totalorder %v225_v35, 2 }
  0x2d   :  { %v1056_v14 = vadd.s32 4294967294, %v96_v13  ;;  %1152 = vset.pattern.permute.xlu1 %v1214_v5  ;;  %1155 = vset.pattern.permute.xlu0 %v1206_v7 }
  0x2e   :  { %468 = vperm.xlu1 %1152, %v1315_v60  }
  0x2f   :  { %vm1057_vm7 = vcmp.lt.s32.totalorder %v1056_v14, 0 }
  0x30   :  { %v99_v16 = vsel %vm1057_vm7, 0, %v1056_v14  ;;  %v457_v14 = vsub.s32 1, %v400_v53  ;;  %vm1037_vm7 = vcmask 1042432  }
  0x31   :  { %v100_v17 = vsub.s32 32, %v99_v16  ;;  %v101_v18 = vshll.u32 %v92_v10, %v99_v16  ;;  %v104_v19 = vsub.s32 4294967266, %v99_v16 }
  0x32   :  { %464 = vperm.xlu1 %1152, %v1269_v4  }
  0x33   :  { %v102_v20 = vshrl.u32 %v84_v15, %v100_v17  ;;  %v105_v21 = vadd.s32 127, %v104_v19 }
  0x35   :  { %v103_v22 = vor.u32 %v102_v20, %v101_v18  ;;  %v106_v23 = vshll.u32 %v105_v21, 23 }
  0x36   :  { %1154 = vset.pattern.permute.xlu1 %v1206_v7  ;;  %v121_v7 = vand.u32 3, %v117_v33 }
  0x37   :  { %v107_v24 = vor.u32 4788187, %v106_v23  ;;  %v110_v25 = vcvt.s32.f32 %v103_v22 }
  0x38   :  { %vm126_vm10 = vcmp.eq.s32.totalorder %v121_v7, 2  ;;  %vm123_vm12 = vcmp.eq.s32.totalorder %v121_v7, 0  ;;  %vm122_vm14 = vcmp.lt.s32.totalorder %v121_v7, 2 }
  0x39   :  { %v108_v26 = vand.u32 2147483647, %v107_v24 }
  0x3b   :  { %v111_v27 = vmul.f32 %v110_v25, %v108_v26 }
  0x3d   :  { %v112_v29 = vxor.u32 2147483648, %v111_v27 }
  0x3f   :  { %v113_v30 = vsel %vm30_vm8, %v112_v29, %v111_v27 }
  0x40   :  { %v116_v4 = vsel %vm29_vm9, %v1262_v0, %v113_v30 }
  0x41   :  { %1156 = vcosq.f32 %v116_v4 }
  0x42   :  { %1158 = vsinq.f32 %v116_v4 }
  0x4e   :  { %v1157_v36 = vpop.eup %1156 }
  0x4f   :  { %v1159_v37 = vpop.eup %1158  ;;  %v127_v38 = vxor.u32 2147483648, %v1157_v36 }
  0x50   :  { %v124_v3 = vxor.u32 2147483648, %v1159_v37 }
  0x51   :  { %v128_v39 = vsel %vm126_vm10, %v127_v38, %v1159_v37  ;;  %v232_v40 = vsel %vm230_vm11, %v127_v38, %v1159_v37 }
  0x52   :  { %v125_v41 = vsel %vm123_vm12, %v1157_v36, %v124_v3  ;;  %v229_v42 = vsel %vm227_vm13, %v1157_v36, %v124_v3 }
  0x53   :  { %v129_v43 = vsel %vm122_vm14, %v125_v41, %v128_v39  ;;  %v233_v44 = vsel %vm226_vm15, %v229_v42, %v232_v40  ;;  %v1216_v39 = vmov 0.0   ;;  %v495_v40 = vld [vmem:[%s1466_s3] sm:$0xff]  ;;  %v689_v41 = vld [vmem:[%s1467_s4 + $0x18] sm:$0xff]  ;;  %v688_v42 = vld [vmem:[%s1467_s4 + $0x10] sm:$0xff] }
  0x54   :  { %v130_v45 = vsel %vm120_vm1, nan, %v129_v43  ;;  %v234_v46 = vsel %vm120_vm1, nan, %v233_v44  ;;  %576 = vmatprep.mubr.f32.mxu1 %v1216_v39  ;;  %707 = vperm.xlu1 %1154, %v689_v41   ;;  %v687_v43 = vld [vmem:[%s1467_s4 + $0x8] sm:$0xff]  ;;  %v879_v44 = vld [vmem:[%s1469_s6] sm:$0xf] }
  0x55   :  { %v244_v48 = vrot.slane %v234_v46, 6  ;;  %v382_v56 = vsub.f32 0.0, %v234_v46  ;;  %v426_v61 = vrot.slane %v130_v45, %v401_v57  ;;  %v482_v20 = vrot.slane %v130_v45, %v457_v14  ;;  %702 = vperm.xlu0 %1155, %v688_v42  }
  0x57   :  { %v247_v49 = vsel %vm246_vm2, %v130_v45, %v244_v48  ;;  %v458_v22 = vrot.slane %v382_v56, %v457_v14  ;;  %v686_v45 = vld [vmem:[%s1467_s4] sm:$0xff] }
  0x58   :  { %1095 = vmatprep.subr.msk.mxu0 %vm281_vm3, %v247_v49  ;;  %697 = vperm.xlu1 %1154, %v687_v43  }
  0x59   :  { %1096 = vmatpush3.msk.msra.mxu0 %vm281_vm3, %v247_v49  ;;  %882 = vperm.xlu0 %1155, %v879_v44  }
  0x5a   :  { %1098 = vmatmul.mubr.msk.f32.vlgmr.msra.gmra.mxu0 %vm268_vm0, %v1315_v60  ;;  %v402_v60 = vrot.slane %v382_v56, %v401_v57 }
  0x5b   :  { %1100 = vmatprep.mubr.msk.f32.mxu0 %vm268_vm0, %v1299_v47 }
  0x5c   :  { %692 = vperm.xlu1 %1154, %v686_v45  }
  0x5e   :  { %1101 = vmatmul.mubr.msk.f32.gmra.mxu0 %vm268_vm0, %v1292_v32  ;;  %vm499_vm0 = vcmask 261120  }
  0x5f   :  { %1111 = vmatprep.mubr.msk.f32.mxu0 %vm499_vm0, %v495_v40 }
  0x7d   :  { %v1347_v51 = vpop.permute.xlu1 %255  ;;  %v1349_v52 = vpop.permute.xlu0 %265 }
  0x85   :  { %v1351_v54 = vpop.permute.xlu1 %250  ;;  %v1353_v55 = vpop.permute.xlu0 %260 }
  0x89   :  { %v397_v59 = vpop.permute.xlu0 %396 }
  0x8a   :  { %v421_v58 = vpop.permute.xlu1 %420  ;;  %v406_v12 = vmul.f32 %v402_v60, %v397_v59 }
  0x8b   :  { %v430_v11 = vmul.f32 %v426_v61, %v421_v58 }
  0x8d   :  { %v393_v62 = vpop.permute.xlu0 %392  ;;  %v434_v19 = vadd.f32 %v430_v11, %v406_v12 }
  0x8e   :  { %v417_v47 = vpop.permute.xlu1 %416  ;;  %v405_v32 = vmul.f32 %v402_v60, %v393_v62 }
  0x8f   :  { %v429_v63 = vmul.f32 %v426_v61, %v417_v47 }
  0x91   :  { %v1355_v1 = vadd.f32 %v429_v63, %v405_v32  ;;  %v389_v5 = vpop.permute.xlu0 %388 }
  0x92   :  { %v413_v2 = vpop.permute.xlu1 %412  ;;  %v404_v8 = vmul.f32 %v402_v60, %v389_v5 }
  0x93   :  { %v428_v6 = vmul.f32 %v426_v61, %v413_v2 }
  0x95   :  { %v1357_v9 = vadd.f32 %v428_v6, %v404_v8  ;;  %v385_v16 = vpop.permute.xlu0 %384 }
  0x96   :  { %v409_v10 = vpop.permute.xlu1 %408  ;;  %v403_v17 = vmul.f32 %v402_v60, %v385_v16 }
  0x97   :  { %v427_v13 = vmul.f32 %v426_v61, %v409_v10 }
  0x99   :  { %v1359_v18 = vadd.f32 %v427_v13, %v403_v17 }
  0x9a   :  { %v453_v24 = vpop.permute.xlu0 %452 }
  0x9b   :  { %v477_v15 = vpop.permute.xlu1 %476  ;;  %v462_v26 = vmul.f32 %v458_v22, %v453_v24 }
  0x9c   :  { %v486_v23 = vmul.f32 %v482_v20, %v477_v15  ;;  %v498_v15 = vld [vmem:[%s1466_s3 + $0x18] sm:$0xff] }
  0x9e   :  { %v490_v28 = vadd.f32 %v486_v23, %v462_v26 }
  0x9f   :  { %v473_v29 = vpop.permute.xlu0 %472 }
  0xa0   :  { %v449_v21 = vpop.permute.xlu1 %448  ;;  %v485_v31 = vmul.f32 %v482_v20, %v473_v29 }
  0xa1   :  { %v461_v27 = vmul.f32 %v458_v22, %v449_v21 }
  0xa3   :  { %v489_v34 = vadd.f32 %v485_v31, %v461_v27 }
  0xa4   :  { %v445_v25 = vpop.permute.xlu1 %444  ;;  %v441_v7 = vpop.permute.xlu0 %440 }
  0xa5   :  { %v460_v30 = vmul.f32 %v458_v22, %v445_v25  ;;  %v459_v36 = vmul.f32 %v458_v22, %v441_v7 }
  0xa9   :  { %v469_v4 = vpop.permute.xlu1 %468 }
  0xaa   :  { %v484_v33 = vmul.f32 %v482_v20, %v469_v4 }
  0xac   :  { %v488_v35 = vadd.f32 %v484_v33, %v460_v30 }
  0xad   :  { %v465_v37 = vpop.permute.xlu1 %464 }
  0xae   :  { %v483_v38 = vmul.f32 %v482_v20, %v465_v37 }
  0xb0   :  { %v487_v3 = vadd.f32 %v483_v38, %v459_v36 }
  0xcf   :  { %v708_v16 = vpop.permute.xlu1 %707 }
  0xd0   :  { %v703_v22 = vpop.permute.xlu0 %702 }
 0x11a   :  { %v1099_v46 = vpop.f32.mrf.mxu0 }
 0x11b   :  { %v357_v48 = vadd.f32 %v1099_v46, %v1347_v51 }
 0x11c   :  { %v351_v49 = vpop.f32.mrf.mxu0 }
 0x11d   :  { %v352_v50 = vadd.f32 %v351_v49, %v1351_v54  ;;  %1160 = vtanh.f32 %v357_v48 }
 0x11e   :  { %v1102_v53 = vpop.f32.mrf.mxu0 }
 0x11f   :  { %v367_v56 = vadd.f32 %v1102_v53, %v1349_v52  ;;  %1162 = vtanh.f32 %v352_v50 }
 0x120   :  { %v361_v57 = vpop.f32.mrf.mxu0 }
 0x121   :  { %1164 = vtanh.f32 %v367_v56  ;;  %v362_v58 = vadd.f32 %v361_v57, %v1353_v55 }
 0x123   :  { %1166 = vtanh.f32 %v362_v58 }
 0x12a   :  { %v1161_v59 = vpop.eup %1160 }
 0x12b   :  { %v375_v62 = vmul.f32 %v1161_v59, %v1161_v59 }
 0x12c   :  { %v1163_v60 = vpop.eup %1162 }
 0x12d   :  { %v374_v2 = vmul.f32 %v1163_v60, %v1163_v60  ;;  %v379_v8 = vsub.f32 1.0, %v375_v62 }
 0x12e   :  { %v1165_v61 = vpop.eup %1164 }
 0x12f   :  { %v377_v47 = vmul.f32 %v1165_v61, %v1165_v61  ;;  %v378_v55 = vsub.f32 1.0, %v374_v2  ;;  %v436_v11 = vmul.f32 %v1357_v9, %v379_v8  ;;  %v492_v12 = vmul.f32 %v488_v35, %v379_v8  ;;  %v497_v9 = vld [vmem:[%s1466_s3 + $0x10] sm:$0xff] }
 0x130   :  { %v1167_v63 = vpop.eup %1166 }
 0x131   :  { %v381_v51 = vsub.f32 1.0, %v377_v47  ;;  %v376_v32 = vmul.f32 %v1167_v63, %v1167_v63  ;;  %v435_v13 = vmul.f32 %v1359_v18, %v378_v55  ;;  %v491_v14 = vmul.f32 %v487_v3, %v378_v55  ;;  %v698_v18 = vpop.permute.xlu1 %697  ;;  %v883_v47 = vpop.permute.xlu0 %882 }
 0x133   :  { %v438_v54 = vmul.f32 %v434_v19, %v381_v51  ;;  %v494_v5 = vmul.f32 %v490_v28, %v381_v51  ;;  %v380_v6 = vsub.f32 1.0, %v376_v32 }
 0x135   :  { %536 = vmatprep.subr.mxu1 %v438_v54  ;;  %1103 = vmatprep.subr.mxu0 %v494_v5  ;;  %v437_v52 = vmul.f32 %v1355_v1, %v380_v6  ;;  %v493_v10 = vmul.f32 %v489_v34, %v380_v6  ;;  %v496_v1 = vld [vmem:[%s1466_s3 + $0x8] sm:$0xff]  ;;  %v693_v23 = vpop.permute.xlu1 %692 }
 0x136   :  { %537 = vmatpush1.msra.mxu1 %v1165_v61  ;;  %1104 = vmatpush3.msra.mxu0 %v494_v5 }
 0x137   :  { %538 = vmatprep.subr.mxu1 %v437_v52  ;;  %1105 = vmatprep.subr.mxu0 %v493_v10 }
 0x138   :  { %539 = vmatpush1.msra.mxu1 %v1167_v63  ;;  %1106 = vmatpush3.msra.mxu0 %v493_v10 }
 0x139   :  { %540 = vmatprep.subr.mxu1 %v436_v11  ;;  %1107 = vmatprep.subr.mxu0 %v492_v12 }
 0x13a   :  { %541 = vmatpush1.msra.mxu1 %v1161_v59  ;;  %1108 = vmatpush3.msra.mxu0 %v492_v12 }
 0x13b   :  { %542 = vmatprep.subr.mxu1 %v435_v13  ;;  %1109 = vmatprep.subr.mxu0 %v491_v14 }
 0x13c   :  { %543 = vmatpush1.msra.mxu1 %v1163_v60  ;;  %1110 = vmatpush3.msra.mxu0 %v491_v14  ;;  %v734_v60 = vld [vmem:[%s1468_s5] sm:$0xf]  ;;  %s1218_s5 = smov [#allocation2]  }
 0x13d   :  { %1067 = vmatmul.mubr.msk.f32.vlgmr.msra.gmra.mxu1 %vm499_vm0, %v495_v40  ;;  %1112 = vmatmul.mubr.msk.f32.vlgmr.msra.gmra.mxu0 %vm499_vm0, %v496_v1  ;;  %s1046_s9 = sshll.u32 %s1218_s5, 4  ;;  %s1047_s9 = int_to_ptr.vmem [resolvable:$true] %s1046_s9 }
 0x13e   :  { %582 = vmatprep.mubr.f32.mxu1 %v1216_v39  ;;  %1114 = vmatprep.mubr.msk.f32.mxu0 %vm499_vm0, %v497_v9  ;;  %s1184_s10 = scalar_lea.vmem %s1047_s9, 64  ;;  %p1189_p1 = scmp.lt.s32.totalorder %s1047_s9, %s1047_s9 }
 0x13f   :  { %1117 = vmatprep.subr.mxu1 %v1216_v39  ;;  %p1185_p0 = scmp.ne.s32.totalorder %s1047_s9, %s1184_s10  ;;  %p1190_p2 = scmp.lt.s32.totalorder %s1184_s10, %s1184_s10 }
 0x141   :  { %1068 = vmatmul.mubr.msk.f32.gmra.mxu1 %vm499_vm0, %v496_v1  ;;  %1115 = vmatmul.mubr.msk.f32.gmra.mxu0 %vm499_vm0, %v498_v15  ;;  %p1191_p3 = por %p1190_p2, %p1189_p1 }
 0x142   :  { %588 = vmatprep.mubr.f32.mxu1 %v1216_v39  ;;  %802 = vmatprep.mubr.f32.mxu0 %v1216_v39 }
 0x143   :  { %p1192_p4 = pnand %p1191_p3, %p1185_p0 }
 0x145   :  { %1069 = vmatmul.mubr.msk.f32.gmra.mxu1 %vm499_vm0, %v497_v9 }
 0x146   :  { %594 = vmatprep.mubr.f32.mxu1 %v1216_v39 }
 0x149   :  { %1070 = vmatmul.mubr.msk.f32.gmra.mxu1 %vm499_vm0, %v498_v15 }
 0x14a   :  { %1125 = vmatprep.mubr.msk.f32.mxu1 %vm1217_vm4, %v1216_v39 }
 0x1fd   :  { %v578_v17 = vpop.f32.mrf.mxu1  ;;  %v1113_v31 = vpop.f32.mrf.mxu0 }
 0x1fe   :  { %v710_v27 = vadd.f32 %v693_v23, %v578_v17 }
 0x1ff   :  { %v580_v19 = vpop.f32.mrf.mxu1  ;;  %v667_v34 = vpop.f32.mrf.mxu0 }
 0x201   :  { %v584_v20 = vpop.f32.mrf.mxu1  ;;  %v1116_v37 = vpop.f32.mrf.mxu0 }
 0x202   :  { %v711_v25 = vadd.f32 %v698_v18, %v584_v20 }
 0x203   :  { %v586_v21 = vpop.f32.mrf.mxu1  ;;  %v677_v44 = vpop.f32.mrf.mxu0 }
 0x205   :  { %v590_v24 = vpop.f32.mrf.mxu1 }
 0x206   :  { %v712_v26 = vadd.f32 %v703_v22, %v590_v24 }
 0x207   :  { %v592_v28 = vpop.f32.mrf.mxu1 }
 0x208   :  { %1168 = vtanh.f32 %v712_v26 }
 0x209   :  { %v596_v29 = vpop.f32.mrf.mxu1  ;;  %1170 = vtanh.f32 %v711_v25 }
 0x20a   :  { %v713_v30 = vadd.f32 %v708_v16, %v596_v29  ;;  %1172 = vtanh.f32 %v710_v27 }
 0x20b   :  { %v598_v43 = vpop.f32.mrf.mxu1 }
 0x20c   :  { %1174 = vtanh.f32 %v713_v30 }
 0x215   :  { %v1169_v4 = vpop.eup %1168 }
 0x216   :  { %v1171_v33 = vpop.eup %1170  ;;  %v720_v35 = vmul.f32 %v1169_v4, %v1169_v4 }
 0x217   :  { %v1173_v7 = vpop.eup %1172  ;;  %v719_v38 = vmul.f32 %v1171_v33, %v1171_v33 }
 0x218   :  { %v718_v40 = vmul.f32 %v1173_v7, %v1173_v7  ;;  %v724_v41 = vsub.f32 1.0, %v720_v35 }
 0x219   :  { %v1175_v36 = vpop.eup %1174  ;;  %v723_v45 = vsub.f32 1.0, %v719_v38 }
 0x21a   :  { %v721_v3 = vmul.f32 %v1175_v36, %v1175_v36  ;;  %v722_v49 = vsub.f32 1.0, %v718_v40  ;;  %v728_v50 = vmul.f32 %v724_v41, %v592_v28  ;;  %v732_v53 = vmul.f32 %v724_v41, %v677_v44 }
 0x21b   :  { %v727_v56 = vmul.f32 %v723_v45, %v586_v21  ;;  %v731_v57 = vmul.f32 %v1113_v31, %v723_v45 }
 0x21c   :  { %v725_v42 = vsub.f32 1.0, %v721_v3  ;;  %v726_v58 = vmul.f32 %v722_v49, %v580_v19  ;;  %v730_v59 = vmul.f32 %v722_v49, %v667_v34 }
 0x21e   :  { %v729_v46 = vmul.f32 %v725_v42, %v598_v43  ;;  %v733_v48 = vmul.f32 %v1116_v37, %v725_v42 }
 0x220   :  { %762 = vmatprep.subr.mxu0 %v729_v46  ;;  %1118 = vmatpush3.msra.mxu1 %v733_v48  ;;  %v1440_v46 = vrot.slane %v1262_v0, 2  ;;  %v940_v48 = vrot.slane %v1262_v0, 1 }
 0x221   :  { %763 = vmatpush1.msra.mxu0 %v1175_v36  ;;  %1119 = vmatprep.subr.mxu1 %v1216_v39 }
 0x222   :  { %764 = vmatprep.subr.mxu0 %v728_v50  ;;  %1120 = vmatpush3.msra.mxu1 %v732_v53 }
 0x223   :  { %765 = vmatpush1.msra.mxu0 %v1169_v4  ;;  %1121 = vmatprep.subr.mxu1 %v1216_v39  ;;  %v935_v4 = vrot.slane %v1262_v0, 3 }
 0x224   :  { %766 = vmatprep.subr.mxu0 %v727_v56  ;;  %1122 = vmatpush3.msra.mxu1 %v731_v57 }
 0x225   :  { %767 = vmatpush1.msra.mxu0 %v1171_v33  ;;  %1123 = vmatprep.subr.mxu1 %v1216_v39 }
 0x226   :  { %768 = vmatprep.subr.mxu0 %v726_v58  ;;  %1124 = vmatpush3.msra.mxu1 %v730_v59 }
 0x227   :  { %769 = vmatpush1.msra.mxu0 %v1173_v7  ;;  %1126 = vmatmul.mubr.msk.f32.vlgmr.msra.gmra.mxu1 %vm499_vm0, %v734_v60 }
 0x228   :  { %1075 = vmatmul.mubr.msk.f32.vlgmr.msra.gmra.mxu0 %vm499_vm0, %v734_v60 }
 0x2e7   :  { %v1418_v61 = vpop.f32.mrf.mxu1 }
 0x2e8   :  { %v804_v62 = vpop.f32.mrf.mxu0  ;;  %v959_v24 = vrot.slane %v1418_v61, 2 }
 0x2e9   :  { %v885_v63 = vadd.f32 %v883_v47, %v804_v62  ;;  %v1127_v51 = vpop.f32.mrf.mxu1 }
 0x2ea   :  { %v1422_v18 = vpop.f32.mrf.mxu0 }
 0x2eb   :  { %v887_v32 = vmin.f32 %v885_v63, 20.0  ;;  %vm886_vm6 = vcmp.gt.f32.partialorder %v885_v63, 20.0  ;;  %v909_v15 = vmul.f32 %v885_v63, %v885_v63  ;;  %v906_v19 = vrot.slane %v885_v63, 2 }
 0x2ec   :  { %v920_v26 = vrot.slane %v1422_v18, 2  ;;  %v924_v38 = vmul.f32 %v885_v63, %v1422_v18  ;;  %v963_v41 = vmul.f32 %v885_v63, %v1418_v61 }
 0x2ed   :  { %v888_v2 = vmul.f32 1.442695, %v887_v32 }
 0x2ef   :  { %1176 = vpow2.f32 %v888_v2 }
 0x2fc   :  { %v1177_v39 = vpop.eup %1176 }
 0x2fd   :  { %v890_v54 = vadd.f32 1.0, %v1177_v39  ;;  %v893_v5 = vmul.f32 -0.5, %v1177_v39  ;;  %v896_v8 = vand.u32 2147483647, %v1177_v39 }
 0x2ff   :  { %1178 = vlog2.f32 %v890_v54  ;;  %v894_v6 = vadd.f32 1.0, %v893_v5  ;;  %vm897_vm5 = vcmp.lt.f32.partialorder %v896_v8, 0.0004427343 }
 0x301   :  { %v895_v55 = vmul.f32 %v1177_v39, %v894_v6 }
 0x30c   :  { %v1179_v52 = vpop.eup %1178 }
 0x30d   :  { %v892_v10 = vmul.f32 0.6931472, %v1179_v52 }
 0x30f   :  { %v898_v11 = vsel %vm897_vm5, %v895_v55, %v892_v10 }
 0x310   :  { %v899_v12 = vsel %vm886_vm6, %v885_v63, %v898_v11 }
 0x311   :  { %v900_v13 = vsub.f32 %v885_v63, %v899_v12  ;;  %v903_v14 = vmul.f32 %v899_v12, %v899_v12  ;;  %v1427_v23 = vmul.f32 %v906_v19, %v899_v12  ;;  %v922_v30 = vmul.f32 %v920_v26, %v899_v12 }
 0x312   :  { %v961_v34 = vmul.f32 %v959_v24, %v899_v12  ;;  %v916_v36 = vmul.f32 2.0, %v899_v12 }
 0x313   :  { %v901_v1 = vmul.f32 1.442695, %v900_v13  ;;  %v911_v9 = vrot.slane %v903_v14, 7  ;;  %v1425_v22 = vadd.f32 0.0001, %v903_v14  ;;  %v1005_v35 = vmul.f32 %v1427_v23, %v1427_v23 }
 0x315   :  { %1180 = vpow2.f32 %v901_v1  ;;  %v913_v16 = vadd.f32 %v911_v9, %v909_v15 }
 0x317   :  { %v1420_v17 = vadd.f32 0.0001, %v913_v16 }
 0x319   :  { %v1002_v20 = vrot.slane %v1420_v17, 2 }
 0x31b   :  { %v1004_v28 = vmul.f32 %v1002_v20, %v1425_v22 }
 0x31d   :  { %v1006_v43 = vsub.f32 %v1004_v28, %v1005_v35  ;;  %v998_v28 = vrot.slane %v1418_v61, 6 }
 0x31f   :  { %1182 = vrcp.f32 %v1006_v43 }
 0x322   :  { %v1181_v21 = vpop.eup %1180 }
 0x323   :  { %v915_v25 = vmul.f32 %v1181_v21, %v1422_v18  ;;  %v955_v27 = vmul.f32 %v1181_v21, %v1418_v61 }
 0x325   :  { %v918_v29 = vmul.f32 %v915_v25, %v906_v19  ;;  %v925_v31 = vmul.f32 %v915_v25, %v899_v12  ;;  %v957_v33 = vmul.f32 %v955_v27, %v906_v19  ;;  %v964_v7 = vmul.f32 %v955_v27, %v899_v12 }
 0x326   :  { %v917_v44 = vmul.f32 %v916_v36, %v915_v25  ;;  %v956_v49 = vmul.f32 %v955_v27, %v916_v36 }
 0x327   :  { %v923_v37 = vadd.f32 %v922_v30, %v918_v29  ;;  %v927_v3 = vrot.slane %v925_v31, 7  ;;  %v962_v40 = vadd.f32 %v961_v34, %v957_v33  ;;  %v966_v42 = vrot.slane %v964_v7, 7 }
 0x328   :  { %v934_v59 = vmul.f32 %v1440_v46, %v917_v44  ;;  %v970_v47 = vmul.f32 %v956_v49, %v1440_v46  ;;  %v991_v29 = vrot.slane %v1422_v18, 7 }
 0x329   :  { %v929_v45 = vadd.f32 %v927_v3, %v924_v38  ;;  %v968_v50 = vadd.f32 %v966_v42, %v963_v41  ;;  %v937_v56 = vmul.f32 %v935_v4, %v923_v37  ;;  %v971_v58 = vmul.f32 %v962_v40, %v935_v4 }
 0x32a   :  { %v939_v51 = vmul.f32 %v1440_v46, %v923_v37  ;;  %v973_v39 = vmul.f32 %v962_v40, %v1440_v46 }
 0x32b   :  { %v930_v53 = vmul.f32 2.0, %v929_v45  ;;  %v969_v57 = vmul.f32 2.0, %v968_v50  ;;  %v938_v63 = vadd.f32 %v937_v56, %v934_v59  ;;  %v972_v2 = vadd.f32 %v971_v58, %v970_v47 }
 0x32c   :  { %v1183_v15 = vpop.eup %1182 }
 0x32d   :  { %v942_v60 = vmul.f32 %v940_v48, %v930_v53  ;;  %v974_v62 = vmul.f32 %v969_v57, %v940_v48  ;;  %v947_v8 = vmul.f32 %v938_v63, %v1440_v46  ;;  %v983_v11 = vmul.f32 %v972_v2, %v1440_v46 }
 0x32e   :  { %v979_v19 = vmul.f32 %v972_v2, %v935_v4  ;;  %v1008_v25 = vmul.f32 %v1183_v15, %v1006_v43 }
 0x32f   :  { %v944_v32 = vrot.slane %v942_v60, 2  ;;  %v976_v54 = vrot.slane %v974_v62, 2 }
 0x330   :  { %v1009_v33 = vsub.f32 2.0, %v1008_v25 }
 0x331   :  { %v946_v5 = vadd.f32 %v944_v32, %v939_v51  ;;  %v978_v6 = vadd.f32 %v976_v54, %v973_v39 }
 0x332   :  { %v1010_v37 = vmul.f32 %v1183_v15, %v1009_v33 }
 0x333   :  { %v951_v52 = vmul.f32 %v946_v5, %v935_v4  ;;  %v949_v10 = vmul.f32 %v946_v5, %v1440_v46  ;;  %v981_v55 = vmul.f32 %v978_v6, %v935_v4 }
 0x334   :  { %v1024_v42 = vrot.slane %v1010_v37, 6 }
 0x335   :  { %v952_v12 = vadd.f32 %v951_v52, %v947_v8  ;;  %v984_v13 = vadd.f32 %v983_v11, %v981_v55  ;;  %v982_v1 = vadd.f32 %v981_v55, %v949_v10 }
 0x337   :  { %v953_v14 = vmul.f32 0.5, %v952_v12  ;;  %v985_v9 = vmul.f32 0.5, %v984_v13 }
 0x339   :  { %v954_v16 = vsub.f32 %v947_v8, %v953_v14  ;;  %v986_v20 = vsub.f32 %v982_v1, %v985_v9 }
 0x33b   :  { %v980_v21 = vadd.f32 %v979_v19, %v954_v16  ;;  %v995_v24 = vrot.slane %v986_v20, 3 }
 0x33d   :  { %v988_v26 = vrot.slane %v980_v21, 4  ;;  %v997_v27 = vsub.f32 %v1262_v0, %v995_v24 }
 0x33f   :  { %v990_v30 = vsub.f32 %v1262_v0, %v988_v26  ;;  %v1000_v31 = vsub.f32 %v997_v27, %v998_v28 }
 0x341   :  { %v993_v34 = vsub.f32 %v990_v30, %v991_v29  ;;  %v1016_v7 = vrot.slane %v1000_v31, 5 }
 0x343   :  { %v1012_v35 = vrot.slane %v993_v34, 2  ;;  %v1028_v36 = vrot.slane %v993_v34, 4  ;;  %v1018_v4 = vmul.f32 %v1016_v7, %v1427_v23  ;;  %v1027_v38 = vmul.f32 %v1016_v7, %v1425_v22 }
 0x345   :  { %v1014_v3 = vmul.f32 %v1012_v35, %v1420_v17  ;;  %v1030_v40 = vmul.f32 %v1028_v36, %v1427_v23  ;;  %v1020_v61 = vrot.slane %v1018_v4, 6 }
 0x347   :  { %v1031_v41 = vsub.f32 %v1027_v38, %v1030_v40  ;;  %v1022_v18 = vsub.f32 %v1014_v3, %v1020_v61 }
 0x349   :  { %v1032_v0 = vmul.f32 %v1031_v41, %v1010_v37  ;;  %v1026_v43 = vmul.f32 %v1024_v42, %v1022_v18 }
 0x34b   :  { %v1034_v44 = vrot.slane %v1032_v0, 5  ;;  %v1036_v45 = vsel %vm246_vm2, %v1440_v46, %v1026_v43 }
 0x34d   :  { %v1038_v48 = vsel %vm1037_vm7, %v1036_v45, %v1034_v44 }
 0x34e   :  { %1039 = vst [vmem:[#allocation2] sm:$0xf] %v1038_v48 }
 0x34f   :  { %1195 = shalt.err (!%p1192_p4)
}
 0x350   :  { %1049 = dma.vmem_to_hbm [thread:$0]  %s1047_s9, 64, %s1470_s7, [#allocation3]  }
 0x351   :  { %1204 = dma.done.wait [#allocation3], 64  }
 0x352   :  { %1205 = vsyncadd [#allocation3], 4294967232 }
 0x353   :  { %1053 = vsyncpa [#allocation3], 1 }

</bundles_post_ra>
